<compile_context>
chip_gen: v7x
topology: tpu7x:2x2x1
jax: 0.10.0
libtpu: 0.0.40
codegen_flags: <defaults>
</compile_context>

<pallas_src>
import functools
import math

import jax
import jax.numpy as jnp
from jax import lax
from jax.experimental import pallas as pl
from jax.experimental.pallas import tpu as pltpu


# --------------------------------------------------------------------------
# Glue: separable bilinear interpolation matrix (nn.Upsample, align_corners=False)
# --------------------------------------------------------------------------
def _bilinear_matrix(out_size: int, in_size: int) -> jnp.ndarray:
    scale = in_size / out_size
    i = jnp.arange(out_size, dtype=jnp.float32)
    src = (i + 0.5) * scale - 0.5
    src = jnp.clip(src, 0.0, float(in_size - 1))
    i0 = jnp.floor(src).astype(jnp.int32)
    i1 = jnp.minimum(i0 + 1, in_size - 1)
    w1 = src - i0.astype(jnp.float32)
    w0 = 1.0 - w1
    m = jnp.zeros((out_size, in_size), jnp.float32)
    rows = jnp.arange(out_size)
    m = m.at[rows, i0].add(w0)
    m = m.at[rows, i1].add(w1)
    return m


def _interp_mats(out_h, out_w, in_h, in_w, temperature):
    # 1/T is folded into the column-interpolation matrix (the upsample is
    # linear), removing the per-pixel divide from the kernel. bf16 operands for
    # MXU throughput; accumulation stays f32 inside the kernel.
    uh = _bilinear_matrix(out_h, in_h)                        # (H, h2)
    uwt = _bilinear_matrix(out_w, in_w).T / temperature       # (w2, W), 1/T folded
    return uh.astype(jnp.bfloat16), uwt.astype(jnp.bfloat16)


def _pick_block(n, max_b=8):
    return max_b if n % max_b == 0 else n


def _vmem_limit_bytes(*arrays):
    need = sum(int(a.size) * a.dtype.itemsize for a in arrays)
    # resident inputs + loop temporaries (~2 extra volumes) + headroom, clamped
    # to the smallest physical VMEM across generations (v7x: 64 MiB).
    return int(min(64 * 1024 * 1024,
                   max(16 * 1024 * 1024, 4 * need + 2 * 1024 * 1024)))


# --------------------------------------------------------------------------
# Kernel 1: bilinear upsample (two MXU matmuls, bf16 in / f32 acc) + sigmoid
#           - batch of B samples per grid step; 1/T pre-folded into uwt.
# --------------------------------------------------------------------------
def _upsampled_rows(uh_ref, uwt_ref, x_ref):
    """Yields (b, sigmoid(upsample(x[b]) / T)) for each sample in the block."""
    bn, h2, w2 = x_ref.shape
    # column interpolation: one MXU matmul for the whole block (M = bn*h2).
    x2 = x_ref[...].reshape(bn * h2, w2).astype(jnp.bfloat16)
    y = jnp.dot(x2, uwt_ref[...], preferred_element_type=jnp.float32)   # (bn*h2, W)
    uh = uh_ref[...]
    for b in range(bn):                                                  # static unroll
        yb = y[b * h2:(b + 1) * h2].astype(jnp.bfloat16)                 # (h2, W)
        up = jnp.dot(uh, yb, preferred_element_type=jnp.float32)         # (H, W)
        yield b, jax.nn.sigmoid(up)


def _upsample_sigmoid_kernel(uh_ref, uwt_ref, x_ref, o_ref):
    for b, res_b in _upsampled_rows(uh_ref, uwt_ref, x_ref):
        o_ref[b] = res_b


def _upsample_sigmoid_mask_kernel(uh_ref, uwt_ref, x_ref, gt_ref,
                                  masked_ref, pos_ref):
    gt = gt_ref[...]                                           # (bn, H, W)
    # per-sample positive-pixel count, sublane-first (sum H, then W).
    pos_w = jnp.sum(gt, axis=1)                                # (bn, W)
    pos_ref[...] = jnp.sum(pos_w, axis=-1, keepdims=True)      # (bn, 1)
    for b, res_b in _upsampled_rows(uh_ref, uwt_ref, x_ref):
        # gt-masked scores: -1 where gt==0 so thresholding counts TP directly.
        masked_ref[b] = jnp.where(gt[b] > 0.0, res_b, -1.0)


def upsample_sigmoid(logits, out_h, out_w, temperature):
    n, h2, w2 = logits.shape
    bn = _pick_block(n)
    uh, uwt = _interp_mats(out_h, out_w, h2, w2, temperature)
    return pl.pallas_call(
        _upsample_sigmoid_kernel,
        out_shape=jax.ShapeDtypeStruct((n, out_h, out_w), jnp.float32),
        grid=(n // bn,),
        in_specs=[
            pl.BlockSpec((out_h, h2), lambda i: (0, 0)),
            pl.BlockSpec((w2, out_w), lambda i: (0, 0)),
            pl.BlockSpec((bn, h2, w2), lambda i: (i, 0, 0)),
        ],
        out_specs=pl.BlockSpec((bn, out_h, out_w), lambda i: (i, 0, 0)),
        compiler_params=pltpu.CompilerParams(
            dimension_semantics=("parallel",)),   # v7x: shard samples over 2 TCs
    )(uh, uwt, logits)


def upsample_sigmoid_mask(logits, gt, out_h, out_w, temperature):
    n, h2, w2 = logits.shape
    bn = _pick_block(n)
    uh, uwt = _interp_mats(out_h, out_w, h2, w2, temperature)
    return pl.pallas_call(
        _upsample_sigmoid_mask_kernel,
        out_shape=(jax.ShapeDtypeStruct((n, out_h, out_w), jnp.float32),
                   jax.ShapeDtypeStruct((n, 1), jnp.float32)),
        grid=(n // bn,),
        in_specs=[
            pl.BlockSpec((out_h, h2), lambda i: (0, 0)),
            pl.BlockSpec((w2, out_w), lambda i: (0, 0)),
            pl.BlockSpec((bn, h2, w2), lambda i: (i, 0, 0)),
            pl.BlockSpec((bn, out_h, out_w), lambda i: (i, 0, 0)),
        ],
        out_specs=(pl.BlockSpec((bn, out_h, out_w), lambda i: (i, 0, 0)),
                   pl.BlockSpec((bn, 1), lambda i: (i, 0))),
        compiler_params=pltpu.CompilerParams(
            dimension_semantics=("parallel",)),
    )(uh, uwt, logits, gt)


# --------------------------------------------------------------------------
# Kernel 2: get_lambda binary search (<= 28 iterations) entirely in-kernel.
#           Inputs are pre-masked scores + per-sample positive counts, so gt
#           never enters the hot loop and 1/pos is hoisted.
# --------------------------------------------------------------------------
def _lambda_search_kernel(masked_ref, pos_ref, lam_ref, *, alpha, b_const, tol, iters):
    masked = masked_ref[...]                                   # (N, H, W)
    pos = pos_ref[...]                                         # (N, 1)
    n = masked.shape[0]
    inv_pos = 1.0 / jnp.maximum(pos, 1.0)                      # hoisted out of loop
    has_pos = pos > 0.0

    def body(_, carry):
        low, high, done = carry
        lam = (low + high) * 0.5
        thr = 1.0 - lam                                        # thr in (0, 1)
        hits = (masked >= thr).astype(jnp.float32)             # gt-negatives are -1
        tp_w = jnp.sum(hits, axis=1)                           # (N, W)  sublane-first
        tp = jnp.sum(tp_w, axis=-1, keepdims=True)             # (N, 1)
        fnr = jnp.where(has_pos, 1.0 - tp * inv_pos, 0.0)
        risk = (jnp.sum(fnr) + b_const) / (n + 1)

        active = done == 0
        eq = risk == alpha
        go_high = active & jnp.logical_not(eq) & (risk < alpha)
        go_low = active & jnp.logical_not(eq) & (risk > alpha)
        new_high = jnp.where(go_high, lam, high)
        new_low = jnp.where(go_low, lam, low)
        finished = eq | ((new_high - new_low) < tol)
        new_done = jnp.where(active & finished, jnp.int32(1), done)
        return new_low, new_high, new_done

    low, _, _ = lax.fori_loop(
        0, iters, body, (jnp.float32(0.0), jnp.float32(1.0), jnp.int32(0)))
    # The PyTorch reference returns `low`; kept for parity.
    lam_ref[0, 0] = low


def find_lambda(masked, pos, alpha, b_const=1.0, tol=1e-8, max_iters=1000):
    # Interval halves every iteration: ceil(log2(1/tol)) steps reach
    # |high-low| < tol, so the reference's 1000-iteration cap is never needed.
    iters = min(max_iters, int(math.ceil(math.log2(1.0 / tol))) + 1)
    kernel = functools.partial(
        _lambda_search_kernel, alpha=alpha, b_const=b_const, tol=tol, iters=iters)
    # TODO(synk): for very large calibration sets (v7x, 64 MiB VMEM) switch to a
    # tiled per-sample summary pass + tiny scalar search instead of holding the
    # whole masked volume in VMEM (bf16 masked scores are a cheaper halfway fix).
    return pl.pallas_call(
        kernel,
        out_shape=jax.ShapeDtypeStruct((1, 1), jnp.float32),
        in_specs=[pl.BlockSpec(memory_space=pltpu.MemorySpace.VMEM),
                  pl.BlockSpec(memory_space=pltpu.MemorySpace.VMEM)],
        out_specs=pl.BlockSpec(memory_space=pltpu.MemorySpace.SMEM),
        compiler_params=pltpu.CompilerParams(
            vmem_limit_bytes=_vmem_limit_bytes(masked, pos)),
    )(masked, pos)


# --------------------------------------------------------------------------
# Kernel 3: test-time thresholding + per-sample FNR list + prediction size
# --------------------------------------------------------------------------
def _eval_kernel(lam_ref, res_ref, gt_ref, fnr_ref, size_ref):
    lam = lam_ref[0, 0]
    res = res_ref[...]
    gt = gt_ref[...]
    pred = (res >= 1.0 - lam).astype(jnp.float32)
    # sublane-first reductions (sum H on VPU, then one lane reduce over W).
    tp = jnp.sum(jnp.sum(pred * gt, axis=1), axis=-1, keepdims=True)    # (N, 1)
    pos = jnp.sum(jnp.sum(gt, axis=1), axis=-1, keepdims=True)          # (N, 1)
    fnr_ref[...] = jnp.where(pos > 0.0, 1.0 - tp / jnp.maximum(pos, 1.0), 0.0)
    size_ref[0, 0] = jnp.sum(jnp.sum(pred, axis=1))


def evaluate(lam, test_res, test_gt):
    n = test_res.shape[0]
    fnr, size = pl.pallas_call(
        _eval_kernel,
        out_shape=(jax.ShapeDtypeStruct((n, 1), jnp.float32),
                   jax.ShapeDtypeStruct((1, 1), jnp.float32)),
        in_specs=[pl.BlockSpec(memory_space=pltpu.MemorySpace.SMEM),
                  pl.BlockSpec(memory_space=pltpu.MemorySpace.VMEM),
                  pl.BlockSpec(memory_space=pltpu.MemorySpace.VMEM)],
        out_specs=(pl.BlockSpec(memory_space=pltpu.MemorySpace.VMEM),
                   pl.BlockSpec(memory_space=pltpu.MemorySpace.SMEM)),
        compiler_params=pltpu.CompilerParams(
            vmem_limit_bytes=_vmem_limit_bytes(test_res, test_gt)),
    )(lam, test_res, test_gt)
    return fnr[:, 0], size[0, 0]


# --------------------------------------------------------------------------
# Glue: synthetic backbone + get_feature + full CRC forward
# --------------------------------------------------------------------------
def synthetic_backbone(images, conv_w):
    # stand-in for self.model(image)[3] (res2): 2x2 avg-pool + 1x1 conv (C -> 1)
    n, c, h, w = images.shape
    pooled = images.reshape(n, c, h // 2, 2, w // 2, 2).mean(axis=(3, 5))
    return jnp.einsum("nchw,c->nhw", pooled, conv_w)           # (N, h/2, w/2)


def get_feature(images, conv_w, temperature):
    n, c, h, w = images.shape
    logits = synthetic_backbone(images, conv_w)
    return upsample_sigmoid(logits, h, w, temperature)          # (N, h, w)


def conformal_risk_control_forward(cal_images, cal_gt, test_images, test_gt,
                                   conv_w, alpha, temperature):
    n, c, h, w = cal_images.shape
    # calibration: fused feature + gt-masking kernel, then in-kernel binary search
    cal_logits = synthetic_backbone(cal_images, conv_w)
    cal_masked, cal_pos = upsample_sigmoid_mask(cal_logits, cal_gt, h, w, temperature)
    lam = find_lambda(cal_masked, cal_pos, alpha)
    # test: feature kernel, then threshold / FNR / size kernel
    test_res = get_feature(test_images, conv_w, temperature)
    fnr_list, size = evaluate(lam, test_res, test_gt)
    n_test = fnr_list.shape[0]
    result_dict = {
        "MeanFDR": jnp.mean(fnr_list),
        "Var": jnp.var(fnr_list, ddof=1),       # torch.var is unbiased by default
        "Avg_size": size / n_test,
    }
    return result_dict, fnr_list


if __name__ == "__main__":
    key = jax.random.PRNGKey(0)
    k1, k2, k3, k4, k5 = jax.random.split(key, 5)

    N_CAL, N_TEST, C, H, W = 8, 4, 4, 16, 16
    cal_images = jax.random.normal(k1, (N_CAL, C, H, W), jnp.float32)
    test_images = jax.random.normal(k2, (N_TEST, C, H, W), jnp.float32)
    cal_gt = (jax.random.uniform(k3, (N_CAL, H, W)) > 0.5).astype(jnp.float32)
    test_gt = (jax.random.uniform(k4, (N_TEST, H, W)) > 0.5).astype(jnp.float32)
    conv_w = 0.5 * jax.random.normal(k5, (C,), jnp.float32)   # deterministic params

    alpha = 0.3        # args.alpha
    temperature = 2.0  # args.T

    result_dict, fnr_list = conformal_risk_control_forward(
        cal_images, cal_gt, test_images, test_gt, conv_w, alpha, temperature)
    jax.block_until_ready((result_dict, fnr_list))
    print("KERNEL_OK")
</pallas_src>

<mosaic_0001>
module attributes {stable_mosaic.version = 11 : i64} {
  func.func @_upsample_sigmoid_mask_kernel(%arg0: i32, %arg1: memref<16x8xbf16, #tpu.memory_space<vmem>>, %arg2: memref<8x16xbf16, #tpu.memory_space<vmem>>, %arg3: memref<8x8x8xf32, #tpu.memory_space<vmem>>, %arg4: memref<8x16x16xf32, #tpu.memory_space<vmem>>, %arg5: memref<8x16x16xf32, #tpu.memory_space<vmem>>, %arg6: memref<8x1xf32, #tpu.memory_space<vmem>>) attributes {dimension_semantics = [#tpu.dimension_semantics<parallel>], iteration_bounds = array<i64: 1>, scalar_prefetch = 0 : i64, scratch_operands = 0 : i64, tpu.core_type = #tpu.core_type<tc>, window_params = [{pipeline_mode = #tpu.pipeline_mode<synchronous>, transform_indices = @transform_0, window_bounds = array<i64: 16, 8>}, {pipeline_mode = #tpu.pipeline_mode<synchronous>, transform_indices = @transform_1, window_bounds = array<i64: 8, 16>}, {transform_indices = @transform_2, window_bounds = array<i64: 8, 8, 8>}, {transform_indices = @transform_3, window_bounds = array<i64: 8, 16, 16>}, {transform_indices = @transform_4, window_bounds = array<i64: 8, 16, 16>}, {transform_indices = @transform_5, window_bounds = array<i64: 8, 1>}]} {
    %c0 = arith.constant 0 : index
    %c0_0 = arith.constant 0 : index
    %c0_1 = arith.constant 0 : index
    %0 = vector.load %arg4[%c0, %c0_0, %c0_1] : memref<8x16x16xf32, #tpu.memory_space<vmem>>, vector<8x16x16xf32>
    %cst = arith.constant dense<0.000000e+00> : vector<8x16xf32>
    %1 = vector.multi_reduction <add>, %0, %cst [1] : vector<8x16x16xf32> to vector<8x16xf32>
    %cst_2 = arith.constant dense<0.000000e+00> : vector<8xf32>
    %2 = vector.multi_reduction <add>, %1, %cst_2 [1] : vector<8x16xf32> to vector<8xf32>
    %3 = vector.shape_cast %2 : vector<8xf32> to vector<8x1xf32>
    %c0_3 = arith.constant 0 : index
    %c0_4 = arith.constant 0 : index
    %4 = vector.load %arg6[%c0_3, %c0_4] : memref<8x1xf32, #tpu.memory_space<vmem>>, vector<8x1xf32>
    tpu.vector_store %arg6[%c0_3, %c0_4], %3 {strides = array<i32>} : memref<8x1xf32, #tpu.memory_space<vmem>>, vector<8x1xf32>,
    %c0_5 = arith.constant 0 : index
    %c0_6 = arith.constant 0 : index
    %c0_7 = arith.constant 0 : index
    %5 = vector.load %arg3[%c0_5, %c0_6, %c0_7] : memref<8x8x8xf32, #tpu.memory_space<vmem>>, vector<8x8x8xf32>
    %6 = vector.shape_cast %5 : vector<8x8x8xf32> to vector<64x8xf32>
    %7 = arith.truncf %6 : vector<64x8xf32> to vector<64x8xbf16>
    %c0_8 = arith.constant 0 : index
    %c0_9 = arith.constant 0 : index
    %8 = vector.load %arg2[%c0_8, %c0_9] : memref<8x16xbf16, #tpu.memory_space<vmem>>, vector<8x16xbf16>
    %cst_10 = arith.constant dense<0.000000e+00> : vector<64x16xf32>
    %9 = tpu.matmul %7, %8, %cst_10 {dimension_numbers = #tpu.dot_dimension_numbers<[1], [0], [0], [1], [0, 0, 1, 1], [], []>} : vector<64x8xbf16>, vector<8x16xbf16>, vector<64x16xf32> -> vector<64x16xf32>
    %c0_11 = arith.constant 0 : index
    %c0_12 = arith.constant 0 : index
    %10 = vector.load %arg1[%c0_11, %c0_12] : memref<16x8xbf16, #tpu.memory_space<vmem>>, vector<16x8xbf16>
    %11 = vector.extract_strided_slice %9 {offsets = [0, 0], sizes = [8, 16], strides = [1, 1]} : vector<64x16xf32> to vector<8x16xf32>
    %12 = arith.truncf %11 : vector<8x16xf32> to vector<8x16xbf16>
    %cst_13 = arith.constant dense<0.000000e+00> : vector<16x16xf32>
    %13 = tpu.matmul %10, %12, %cst_13 {dimension_numbers = #tpu.dot_dimension_numbers<[1], [0], [0], [1], [0, 0, 1, 1], [], []>} : vector<16x8xbf16>, vector<8x16xbf16>, vector<16x16xf32> -> vector<16x16xf32>
    %14 = arith.negf %13 : vector<16x16xf32>
    %15 = math.exp %14 : vector<16x16xf32>
    %cst_14 = arith.constant 1.000000e+00 : f32
    %16 = vector.broadcast %cst_14 : f32 to vector<16x16xf32>
    %17 = arith.addf %16, %15 : vector<16x16xf32>
    %18 = arith.divf %16, %17 : vector<16x16xf32>
    %19 = vector.extract_strided_slice %0 {offsets = [0, 0, 0], sizes = [1, 16, 16], strides = [1, 1, 1]} : vector<8x16x16xf32> to vector<1x16x16xf32>
    %20 = vector.shape_cast %19 : vector<1x16x16xf32> to vector<16x16xf32>
    %cst_15 = arith.constant 0.000000e+00 : f32
    %21 = vector.broadcast %cst_15 : f32 to vector<16x16xf32>
    %22 = arith.cmpf ogt, %20, %21 : vector<16x16xf32>
    %cst_16 = arith.constant -1.000000e+00 : f32
    %23 = vector.broadcast %cst_16 : f32 to vector<16x16xf32>
    %24 = arith.select %22, %18, %23 : vector<16x16xi1>, vector<16x16xf32>
    %c0_17 = arith.constant 0 : index
    %c0_18 = arith.constant 0 : index
    %c0_19 = arith.constant 0 : index
    %25 = vector.load %arg5[%c0_17, %c0_18, %c0_19] : memref<8x16x16xf32, #tpu.memory_space<vmem>>, vector<1x16x16xf32>
    %26 = vector.shape_cast %25 : vector<1x16x16xf32> to vector<16x16xf32>
    %27 = vector.shape_cast %24 : vector<16x16xf32> to vector<1x16x16xf32>
    tpu.vector_store %arg5[%c0_17, %c0_18, %c0_19], %27 {strides = array<i32>} : memref<8x16x16xf32, #tpu.memory_space<vmem>>, vector<1x16x16xf32>,
    %28 = vector.extract_strided_slice %9 {offsets = [8, 0], sizes = [8, 16], strides = [1, 1]} : vector<64x16xf32> to vector<8x16xf32>
    %29 = arith.truncf %28 : vector<8x16xf32> to vector<8x16xbf16>
    %cst_20 = arith.constant dense<0.000000e+00> : vector<16x16xf32>
    %30 = tpu.matmul %10, %29, %cst_20 {dimension_numbers = #tpu.dot_dimension_numbers<[1], [0], [0], [1], [0, 0, 1, 1], [], []>} : vector<16x8xbf16>, vector<8x16xbf16>, vector<16x16xf32> -> vector<16x16xf32>
    %31 = arith.negf %30 : vector<16x16xf32>
    %32 = math.exp %31 : vector<16x16xf32>
    %cst_21 = arith.constant 1.000000e+00 : f32
    %33 = vector.broadcast %cst_21 : f32 to vector<16x16xf32>
    %34 = arith.addf %33, %32 : vector<16x16xf32>
    %35 = arith.divf %33, %34 : vector<16x16xf32>
    %36 = vector.extract_strided_slice %0 {offsets = [1, 0, 0], sizes = [1, 16, 16], strides = [1, 1, 1]} : vector<8x16x16xf32> to vector<1x16x16xf32>
    %37 = vector.shape_cast %36 : vector<1x16x16xf32> to vector<16x16xf32>
    %cst_22 = arith.constant 0.000000e+00 : f32
    %38 = vector.broadcast %cst_22 : f32 to vector<16x16xf32>
    %39 = arith.cmpf ogt, %37, %38 : vector<16x16xf32>
    %cst_23 = arith.constant -1.000000e+00 : f32
    %40 = vector.broadcast %cst_23 : f32 to vector<16x16xf32>
    %41 = arith.select %39, %35, %40 : vector<16x16xi1>, vector<16x16xf32>
    %c1 = arith.constant 1 : index
    %c0_24 = arith.constant 0 : index
    %c0_25 = arith.constant 0 : index
    %42 = vector.load %arg5[%c1, %c0_24, %c0_25] : memref<8x16x16xf32, #tpu.memory_space<vmem>>, vector<1x16x16xf32>
    %43 = vector.shape_cast %42 : vector<1x16x16xf32> to vector<16x16xf32>
    %44 = vector.shape_cast %41 : vector<16x16xf32> to vector<1x16x16xf32>
    tpu.vector_store %arg5[%c1, %c0_24, %c0_25], %44 {strides = array<i32>} : memref<8x16x16xf32, #tpu.memory_space<vmem>>, vector<1x16x16xf32>,
    %45 = vector.extract_strided_slice %9 {offsets = [16, 0], sizes = [8, 16], strides = [1, 1]} : vector<64x16xf32> to vector<8x16xf32>
    %46 = arith.truncf %45 : vector<8x16xf32> to vector<8x16xbf16>
    %cst_26 = arith.constant dense<0.000000e+00> : vector<16x16xf32>
    %47 = tpu.matmul %10, %46, %cst_26 {dimension_numbers = #tpu.dot_dimension_numbers<[1], [0], [0], [1], [0, 0, 1, 1], [], []>} : vector<16x8xbf16>, vector<8x16xbf16>, vector<16x16xf32> -> vector<16x16xf32>
    %48 = arith.negf %47 : vector<16x16xf32>
    %49 = math.exp %48 : vector<16x16xf32>
    %cst_27 = arith.constant 1.000000e+00 : f32
    %50 = vector.broadcast %cst_27 : f32 to vector<16x16xf32>
    %51 = arith.addf %50, %49 : vector<16x16xf32>
    %52 = arith.divf %50, %51 : vector<16x16xf32>
    %53 = vector.extract_strided_slice %0 {offsets = [2, 0, 0], sizes = [1, 16, 16], strides = [1, 1, 1]} : vector<8x16x16xf32> to vector<1x16x16xf32>
    %54 = vector.shape_cast %53 : vector<1x16x16xf32> to vector<16x16xf32>
    %cst_28 = arith.constant 0.000000e+00 : f32
    %55 = vector.broadcast %cst_28 : f32 to vector<16x16xf32>
    %56 = arith.cmpf ogt, %54, %55 : vector<16x16xf32>
    %cst_29 = arith.constant -1.000000e+00 : f32
    %57 = vector.broadcast %cst_29 : f32 to vector<16x16xf32>
    %58 = arith.select %56, %52, %57 : vector<16x16xi1>, vector<16x16xf32>
    %c2 = arith.constant 2 : index
    %c0_30 = arith.constant 0 : index
    %c0_31 = arith.constant 0 : index
    %59 = vector.load %arg5[%c2, %c0_30, %c0_31] : memref<8x16x16xf32, #tpu.memory_space<vmem>>, vector<1x16x16xf32>
    %60 = vector.shape_cast %59 : vector<1x16x16xf32> to vector<16x16xf32>
    %61 = vector.shape_cast %58 : vector<16x16xf32> to vector<1x16x16xf32>
    tpu.vector_store %arg5[%c2, %c0_30, %c0_31], %61 {strides = array<i32>} : memref<8x16x16xf32, #tpu.memory_space<vmem>>, vector<1x16x16xf32>,
    %62 = vector.extract_strided_slice %9 {offsets = [24, 0], sizes = [8, 16], strides = [1, 1]} : vector<64x16xf32> to vector<8x16xf32>
    %63 = arith.truncf %62 : vector<8x16xf32> to vector<8x16xbf16>
    %cst_32 = arith.constant dense<0.000000e+00> : vector<16x16xf32>
    %64 = tpu.matmul %10, %63, %cst_32 {dimension_numbers = #tpu.dot_dimension_numbers<[1], [0], [0], [1], [0, 0, 1, 1], [], []>} : vector<16x8xbf16>, vector<8x16xbf16>, vector<16x16xf32> -> vector<16x16xf32>
    %65 = arith.negf %64 : vector<16x16xf32>
    %66 = math.exp %65 : vector<16x16xf32>
    %cst_33 = arith.constant 1.000000e+00 : f32
    %67 = vector.broadcast %cst_33 : f32 to vector<16x16xf32>
    %68 = arith.addf %67, %66 : vector<16x16xf32>
    %69 = arith.divf %67, %68 : vector<16x16xf32>
    %70 = vector.extract_strided_slice %0 {offsets = [3, 0, 0], sizes = [1, 16, 16], strides = [1, 1, 1]} : vector<8x16x16xf32> to vector<1x16x16xf32>
    %71 = vector.shape_cast %70 : vector<1x16x16xf32> to vector<16x16xf32>
    %cst_34 = arith.constant 0.000000e+00 : f32
    %72 = vector.broadcast %cst_34 : f32 to vector<16x16xf32>
    %73 = arith.cmpf ogt, %71, %72 : vector<16x16xf32>
    %cst_35 = arith.constant -1.000000e+00 : f32
    %74 = vector.broadcast %cst_35 : f32 to vector<16x16xf32>
    %75 = arith.select %73, %69, %74 : vector<16x16xi1>, vector<16x16xf32>
    %c3 = arith.constant 3 : index
    %c0_36 = arith.constant 0 : index
    %c0_37 = arith.constant 0 : index
    %76 = vector.load %arg5[%c3, %c0_36, %c0_37] : memref<8x16x16xf32, #tpu.memory_space<vmem>>, vector<1x16x16xf32>
    %77 = vector.shape_cast %76 : vector<1x16x16xf32> to vector<16x16xf32>
    %78 = vector.shape_cast %75 : vector<16x16xf32> to vector<1x16x16xf32>
    tpu.vector_store %arg5[%c3, %c0_36, %c0_37], %78 {strides = array<i32>} : memref<8x16x16xf32, #tpu.memory_space<vmem>>, vector<1x16x16xf32>,
    %79 = vector.extract_strided_slice %9 {offsets = [32, 0], sizes = [8, 16], strides = [1, 1]} : vector<64x16xf32> to vector<8x16xf32>
    %80 = arith.truncf %79 : vector<8x16xf32> to vector<8x16xbf16>
    %cst_38 = arith.constant dense<0.000000e+00> : vector<16x16xf32>
    %81 = tpu.matmul %10, %80, %cst_38 {dimension_numbers = #tpu.dot_dimension_numbers<[1], [0], [0], [1], [0, 0, 1, 1], [], []>} : vector<16x8xbf16>, vector<8x16xbf16>, vector<16x16xf32> -> vector<16x16xf32>
    %82 = arith.negf %81 : vector<16x16xf32>
    %83 = math.exp %82 : vector<16x16xf32>
    %cst_39 = arith.constant 1.000000e+00 : f32
    %84 = vector.broadcast %cst_39 : f32 to vector<16x16xf32>
    %85 = arith.addf %84, %83 : vector<16x16xf32>
    %86 = arith.divf %84, %85 : vector<16x16xf32>
    %87 = vector.extract_strided_slice %0 {offsets = [4, 0, 0], sizes = [1, 16, 16], strides = [1, 1, 1]} : vector<8x16x16xf32> to vector<1x16x16xf32>
    %88 = vector.shape_cast %87 : vector<1x16x16xf32> to vector<16x16xf32>
    %cst_40 = arith.constant 0.000000e+00 : f32
    %89 = vector.broadcast %cst_40 : f32 to vector<16x16xf32>
    %90 = arith.cmpf ogt, %88, %89 : vector<16x16xf32>
    %cst_41 = arith.constant -1.000000e+00 : f32
    %91 = vector.broadcast %cst_41 : f32 to vector<16x16xf32>
    %92 = arith.select %90, %86, %91 : vector<16x16xi1>, vector<16x16xf32>
    %c4 = arith.constant 4 : index
    %c0_42 = arith.constant 0 : index
    %c0_43 = arith.constant 0 : index
    %93 = vector.load %arg5[%c4, %c0_42, %c0_43] : memref<8x16x16xf32, #tpu.memory_space<vmem>>, vector<1x16x16xf32>
    %94 = vector.shape_cast %93 : vector<1x16x16xf32> to vector<16x16xf32>
    %95 = vector.shape_cast %92 : vector<16x16xf32> to vector<1x16x16xf32>
    tpu.vector_store %arg5[%c4, %c0_42, %c0_43], %95 {strides = array<i32>} : memref<8x16x16xf32, #tpu.memory_space<vmem>>, vector<1x16x16xf32>,
    %96 = vector.extract_strided_slice %9 {offsets = [40, 0], sizes = [8, 16], strides = [1, 1]} : vector<64x16xf32> to vector<8x16xf32>
    %97 = arith.truncf %96 : vector<8x16xf32> to vector<8x16xbf16>
    %cst_44 = arith.constant dense<0.000000e+00> : vector<16x16xf32>
    %98 = tpu.matmul %10, %97, %cst_44 {dimension_numbers = #tpu.dot_dimension_numbers<[1], [0], [0], [1], [0, 0, 1, 1], [], []>} : vector<16x8xbf16>, vector<8x16xbf16>, vector<16x16xf32> -> vector<16x16xf32>
    %99 = arith.negf %98 : vector<16x16xf32>
    %100 = math.exp %99 : vector<16x16xf32>
    %cst_45 = arith.constant 1.000000e+00 : f32
    %101 = vector.broadcast %cst_45 : f32 to vector<16x16xf32>
    %102 = arith.addf %101, %100 : vector<16x16xf32>
    %103 = arith.divf %101, %102 : vector<16x16xf32>
    %104 = vector.extract_strided_slice %0 {offsets = [5, 0, 0], sizes = [1, 16, 16], strides = [1, 1, 1]} : vector<8x16x16xf32> to vector<1x16x16xf32>
    %105 = vector.shape_cast %104 : vector<1x16x16xf32> to vector<16x16xf32>
    %cst_46 = arith.constant 0.000000e+00 : f32
    %106 = vector.broadcast %cst_46 : f32 to vector<16x16xf32>
    %107 = arith.cmpf ogt, %105, %106 : vector<16x16xf32>
    %cst_47 = arith.constant -1.000000e+00 : f32
    %108 = vector.broadcast %cst_47 : f32 to vector<16x16xf32>
    %109 = arith.select %107, %103, %108 : vector<16x16xi1>, vector<16x16xf32>
    %c5 = arith.constant 5 : index
    %c0_48 = arith.constant 0 : index
    %c0_49 = arith.constant 0 : index
    %110 = vector.load %arg5[%c5, %c0_48, %c0_49] : memref<8x16x16xf32, #tpu.memory_space<vmem>>, vector<1x16x16xf32>
    %111 = vector.shape_cast %110 : vector<1x16x16xf32> to vector<16x16xf32>
    %112 = vector.shape_cast %109 : vector<16x16xf32> to vector<1x16x16xf32>
    tpu.vector_store %arg5[%c5, %c0_48, %c0_49], %112 {strides = array<i32>} : memref<8x16x16xf32, #tpu.memory_space<vmem>>, vector<1x16x16xf32>,
    %113 = vector.extract_strided_slice %9 {offsets = [48, 0], sizes = [8, 16], strides = [1, 1]} : vector<64x16xf32> to vector<8x16xf32>
    %114 = arith.truncf %113 : vector<8x16xf32> to vector<8x16xbf16>
    %cst_50 = arith.constant dense<0.000000e+00> : vector<16x16xf32>
    %115 = tpu.matmul %10, %114, %cst_50 {dimension_numbers = #tpu.dot_dimension_numbers<[1], [0], [0], [1], [0, 0, 1, 1], [], []>} : vector<16x8xbf16>, vector<8x16xbf16>, vector<16x16xf32> -> vector<16x16xf32>
    %116 = arith.negf %115 : vector<16x16xf32>
    %117 = math.exp %116 : vector<16x16xf32>
    %cst_51 = arith.constant 1.000000e+00 : f32
    %118 = vector.broadcast %cst_51 : f32 to vector<16x16xf32>
    %119 = arith.addf %118, %117 : vector<16x16xf32>
    %120 = arith.divf %118, %119 : vector<16x16xf32>
    %121 = vector.extract_strided_slice %0 {offsets = [6, 0, 0], sizes = [1, 16, 16], strides = [1, 1, 1]} : vector<8x16x16xf32> to vector<1x16x16xf32>
    %122 = vector.shape_cast %121 : vector<1x16x16xf32> to vector<16x16xf32>
    %cst_52 = arith.constant 0.000000e+00 : f32
    %123 = vector.broadcast %cst_52 : f32 to vector<16x16xf32>
    %124 = arith.cmpf ogt, %122, %123 : vector<16x16xf32>
    %cst_53 = arith.constant -1.000000e+00 : f32
    %125 = vector.broadcast %cst_53 : f32 to vector<16x16xf32>
    %126 = arith.select %124, %120, %125 : vector<16x16xi1>, vector<16x16xf32>
    %c6 = arith.constant 6 : index
    %c0_54 = arith.constant 0 : index
    %c0_55 = arith.constant 0 : index
    %127 = vector.load %arg5[%c6, %c0_54, %c0_55] : memref<8x16x16xf32, #tpu.memory_space<vmem>>, vector<1x16x16xf32>
    %128 = vector.shape_cast %127 : vector<1x16x16xf32> to vector<16x16xf32>
    %129 = vector.shape_cast %126 : vector<16x16xf32> to vector<1x16x16xf32>
    tpu.vector_store %arg5[%c6, %c0_54, %c0_55], %129 {strides = array<i32>} : memref<8x16x16xf32, #tpu.memory_space<vmem>>, vector<1x16x16xf32>,
    %130 = vector.extract_strided_slice %9 {offsets = [56, 0], sizes = [8, 16], strides = [1, 1]} : vector<64x16xf32> to vector<8x16xf32>
    %131 = arith.truncf %130 : vector<8x16xf32> to vector<8x16xbf16>
    %cst_56 = arith.constant dense<0.000000e+00> : vector<16x16xf32>
    %132 = tpu.matmul %10, %131, %cst_56 {dimension_numbers = #tpu.dot_dimension_numbers<[1], [0], [0], [1], [0, 0, 1, 1], [], []>} : vector<16x8xbf16>, vector<8x16xbf16>, vector<16x16xf32> -> vector<16x16xf32>
    %133 = arith.negf %132 : vector<16x16xf32>
    %134 = math.exp %133 : vector<16x16xf32>
    %cst_57 = arith.constant 1.000000e+00 : f32
    %135 = vector.broadcast %cst_57 : f32 to vector<16x16xf32>
    %136 = arith.addf %135, %134 : vector<16x16xf32>
    %137 = arith.divf %135, %136 : vector<16x16xf32>
    %138 = vector.extract_strided_slice %0 {offsets = [7, 0, 0], sizes = [1, 16, 16], strides = [1, 1, 1]} : vector<8x16x16xf32> to vector<1x16x16xf32>
    %139 = vector.shape_cast %138 : vector<1x16x16xf32> to vector<16x16xf32>
    %cst_58 = arith.constant 0.000000e+00 : f32
    %140 = vector.broadcast %cst_58 : f32 to vector<16x16xf32>
    %141 = arith.cmpf ogt, %139, %140 : vector<16x16xf32>
    %cst_59 = arith.constant -1.000000e+00 : f32
    %142 = vector.broadcast %cst_59 : f32 to vector<16x16xf32>
    %143 = arith.select %141, %137, %142 : vector<16x16xi1>, vector<16x16xf32>
    %c7 = arith.constant 7 : index
    %c0_60 = arith.constant 0 : index
    %c0_61 = arith.constant 0 : index
    %144 = vector.load %arg5[%c7, %c0_60, %c0_61] : memref<8x16x16xf32, #tpu.memory_space<vmem>>, vector<1x16x16xf32>
    %145 = vector.shape_cast %144 : vector<1x16x16xf32> to vector<16x16xf32>
    %146 = vector.shape_cast %143 : vector<16x16xf32> to vector<1x16x16xf32>
    tpu.vector_store %arg5[%c7, %c0_60, %c0_61], %146 {strides = array<i32>} : memref<8x16x16xf32, #tpu.memory_space<vmem>>, vector<1x16x16xf32>,
    return
  }
  func.func @transform_0(%arg0: i32) -> (i32, i32) {
    %c0_i32 = arith.constant 0 : i32
    %c0_i32_0 = arith.constant 0 : i32
    %c0_i32_1 = arith.constant 0 : i32
    return %c0_i32, %c0_i32_0 : i32, i32
  }
  func.func @transform_1(%arg0: i32) -> (i32, i32) {
    %c0_i32 = arith.constant 0 : i32
    %c0_i32_0 = arith.constant 0 : i32
    %c0_i32_1 = arith.constant 0 : i32
    return %c0_i32, %c0_i32_0 : i32, i32
  }
  func.func @transform_2(%arg0: i32) -> (i32, i32, i32) {
    %c0_i32 = arith.constant 0 : i32
    %c0_i32_0 = arith.constant 0 : i32
    %c0_i32_1 = arith.constant 0 : i32
    return %arg0, %c0_i32, %c0_i32_0 : i32, i32, i32
  }
  func.func @transform_3(%arg0: i32) -> (i32, i32, i32) {
    %c0_i32 = arith.constant 0 : i32
    %c0_i32_0 = arith.constant 0 : i32
    %c0_i32_1 = arith.constant 0 : i32
    return %arg0, %c0_i32, %c0_i32_0 : i32, i32, i32
  }
  func.func @transform_4(%arg0: i32) -> (i32, i32, i32) {
    %c0_i32 = arith.constant 0 : i32
    %c0_i32_0 = arith.constant 0 : i32
    %c0_i32_1 = arith.constant 0 : i32
    return %arg0, %c0_i32, %c0_i32_0 : i32, i32, i32
  }
  func.func @transform_5(%arg0: i32) -> (i32, i32) {
    %c0_i32 = arith.constant 0 : i32
    %c0_i32_0 = arith.constant 0 : i32
    return %arg0, %c0_i32 : i32, i32
  }
}

</mosaic_0001>

<bundles_post_ra>
// kernel: tpu_custom_call.1
= control target key start
LH: loop header
LB: loop body
LE: loop exit
PB: predicated region body
PF: predicated region fallthrough
CT: control target
= control target key end

     0   :  { %11 = vsyncpa [#allocation3], 0  ;;  %s1301_s0 = inlined_call_operand.vmem [shape: bf16[16,8], index: 0, kind: input, shape index: {}]   ;;  %s1302_s1 = inlined_call_operand.vmem [shape: bf16[8,16], index: 1, kind: input, shape index: {}]   ;;  %s1303_s2 = inlined_call_operand.hbm [shape: f32[8,8,8], index: 2, kind: input, shape index: {}]   ;;  %s1304_s3 = inlined_call_operand.hbm [shape: f32[8,16,16], index: 3, kind: input, shape index: {}]   ;;  %s1305_s4 = inlined_call_operand.hbm [shape: f32[8,16,16], index: 4, kind: output, shape index: {0}]   ;;  %s1306_s5 = inlined_call_operand.vmem [shape: f32[8,1], index: 5, kind: output, shape index: {1}]  }
   0x1   :  { %12 = vsyncpa [#allocation6], 0 }
   0x2   :  { %13 = vsyncpa [#allocation4], 0  ;;  %s1057_s18 = smov [#allocation2]   ;;  %s985_s22 = scalar_lea.hbm %s1303_s2, 1024 }
   0x3   :  { %s23_s19 = sshll.u32 %s1057_s18, 4  ;;  %p986_p0 = scmp.ne.s32.totalorder %s1303_s2, %s985_s22  ;;  %s24_s19 = int_to_ptr.vmem [resolvable:$true] %s23_s19 }
   0x4   :  { %p989_p1 = scmp.lt.u32.totalorder %s985_s22, %s1303_s2 }
   0x6   :  { %p991_p2 = pnand %p989_p1, %p986_p0 }
   0x8   :  { %994 = shalt.err (!%p991_p2)
}
   0x9   :  { %s995_s27 = scalar_lea.vmem %s24_s19, 1024  ;;  %p1000_p4 = scmp.lt.s32.totalorder %s24_s19, %s24_s19 }
   0xa   :  { %p996_p3 = scmp.ne.s32.totalorder %s24_s19, %s995_s27  ;;  %p1001_p5 = scmp.lt.s32.totalorder %s995_s27, %s995_s27 }
   0xc   :  { %p1002_p6 = por %p1001_p5, %p1000_p4 }
   0xe   :  { %p1003_p7 = pnand %p1002_p6, %p996_p3 }
  0x10   :  { %1006 = shalt.err (!%p1003_p7)
}
  0x11   :  { %s1058_s28 = smov 128   ;;  %s1059_s29 = smov 8  }
  0x12   :  { %29 = dma.hbm_to_vmem [thread:$0]  %s1303_s2, 1024, %s24_s19, [#allocation3], %s1058_s28, %s1058_s28, %s1059_s29  }
  0x13   :  { %s1060_s7 = smov [#allocation5]   ;;  %s1007_s11 = scalar_lea.hbm %s1304_s3, 2048 }
  0x14   :  { %s35_s8 = sshll.u32 %s1060_s7, 4  ;;  %p1008_p8 = scmp.ne.s32.totalorder %s1304_s3, %s1007_s11  ;;  %s36_s8 = int_to_ptr.vmem [resolvable:$true] %s35_s8 }
  0x15   :  { %p1011_p9 = scmp.lt.u32.totalorder %s1007_s11, %s1304_s3 }
  0x17   :  { %p1013_p10 = pnand %p1011_p9, %p1008_p8 }
  0x19   :  { %1016 = shalt.err (!%p1013_p10)
}
  0x1a   :  { %s1017_s16 = scalar_lea.vmem %s36_s8, 2048  ;;  %p1022_p12 = scmp.lt.s32.totalorder %s36_s8, %s36_s8 }
  0x1b   :  { %p1018_p11 = scmp.ne.s32.totalorder %s36_s8, %s1017_s16  ;;  %p1023_p13 = scmp.lt.s32.totalorder %s1017_s16, %s1017_s16 }
  0x1d   :  { %p1024_p0 = por %p1023_p13, %p1022_p12 }
  0x1f   :  { %p1025_p1 = pnand %p1024_p0, %p1018_p11 }
  0x21   :  { %1028 = shalt.err (!%p1025_p1)
}
  0x22   :  { %41 = dma.hbm_to_vmem [thread:$0]  %s1304_s3, 2048, %s36_s8, [#allocation6], %s1058_s28, %s1058_s28, %s1059_s29  }
  0x23   :  { %1051 = dma.done.wait [#allocation3], 1024  }
  0x24   :  { %1052 = vsyncadd [#allocation3], 4294966272 }
  0x25   :  { %1053 = dma.done.wait [#allocation6], 2048  }
  0x26   :  { %1054 = vsyncadd [#allocation6], 4294965248  ;;  %vm192_vm0 = vcmask 1043456   ;;  %v178_v0 = vld [vmem:[%s1302_s1] sm:$0xf]  ;;  %v167_v2 = vld [vmem:[#allocation2 + $0x8] sm:$0xff] }
  0x27   :  { %v166_v1 = vld [vmem:[#allocation2] sm:$0xff]  ;;  %vm179_vm1 = vcmask 64512   ;;  %912 = vmatprep.subr.msk.bf16.mxu0 %vm192_vm0, %v178_v0  ;;  %v194_v3 = vsel %vm192_vm0, %v178_v0, 0  ;;  %v168_v5 = vld [vmem:[#allocation2 + $0x10] sm:$0xff]  ;;  %v169_v6 = vld [vmem:[#allocation2 + $0x18] sm:$0xff]  ;;  %v1061_v14 = vmov 0.0  }
  0x28   :  { %v174_v4 = vpack.c.bf16 %v167_v2, %v166_v1  ;;  %v170_v7 = vld [vmem:[#allocation2 + $0x20] sm:$0xff]  ;;  %855 = vmatpush3.bf16.msra.mxu0 %v194_v3  ;;  %v175_v8 = vpack.c.bf16 %v169_v6, %v168_v5  ;;  %v171_v9 = vld [vmem:[#allocation2 + $0x28] sm:$0xff]  ;;  %v172_v11 = vld [vmem:[#allocation2 + $0x30] sm:$0xff]  ;;  %864 = vmatprep.subr.bf16.mxu1 %v1061_v14  ;;  %vm1062_vm2 = vmmov 0   ;;  %vm65_vm3 = vcmask 130048  }
  0x29   :  { %v176_v10 = vpack.c.bf16 %v171_v9, %v170_v7  ;;  %v173_v12 = vld [vmem:[#allocation2 + $0x38] sm:$0xff]  ;;  %876 = vmatprep.subr.bf16.mxu0 %v1061_v14  ;;  %866 = vmatprep.mubr.msk.bf16.mxu1 %vm1062_vm2, %v1061_v14  ;;  %v1139_v15 = vld [vmem:[#allocation5] sm:$0xff]  ;;  %v1141_v16 = vld [vmem:[#allocation5 + $0x8] sm:$0xff]  ;;  %vm146_vm4 = vcmask 1041409   ;;  %vm148_vm5 = vcmask 1042434   ;;  %vm150_vm6 = vcmask 1043459  }
  0x2a   :  { %856 = vmatprep.mubr.msk.bf16.mxu0 %vm179_vm1, %v174_v4  ;;  %v177_v13 = vpack.c.bf16 %v173_v12, %v172_v11  ;;  %v1143_v17 = vld [vmem:[#allocation5 + $0x10] sm:$0xff]  ;;  %v1145_v18 = vld [vmem:[#allocation5 + $0x18] sm:$0xff]  ;;  %v1147_v19 = vld [vmem:[#allocation5 + $0x20] sm:$0xff]  ;;  %v66_v21 = vsel %vm65_vm3, %v1139_v15, 0.0  ;;  %v67_v22 = vsel %vm65_vm3, %v1141_v16, 0.0  ;;  %vm152_vm7 = vcmask 1044484  }
  0x2b   :  { %857 = vmatmul.mubr.msk.bf16.vlgmr.msra.gmra.mrb[0].mxu0 %vm179_vm1, %v175_v8  ;;  %v1149_v20 = vld [vmem:[#allocation5 + $0x28] sm:$0xff]  ;;  %v75_v23 = vsel %vm65_vm3, %v1143_v17, 0.0  ;;  %v1157_v24 = vld [vmem:[#allocation5 + $0x30] sm:$0xff]  ;;  %v1159_v25 = vld [vmem:[#allocation5 + $0x38] sm:$0xff]  ;;  %v68_v27 = vadd.f32 %v67_v22, %v66_v21  ;;  %v76_v28 = vsel %vm65_vm3, %v1145_v18, 0.0  ;;  %v84_v29 = vsel %vm65_vm3, %v1147_v19, 0.0 }
  0x2c   :  { %860 = vmatprep.mubr.msk.bf16.mxu0 %vm179_vm1, %v176_v10  ;;  %v1161_v26 = vld [vmem:[#allocation5 + $0x40] sm:$0xff]  ;;  %v85_v30 = vsel %vm65_vm3, %v1149_v20, 0.0  ;;  %v1169_v31 = vld [vmem:[#allocation5 + $0x48] sm:$0xff]  ;;  %v1171_v32 = vld [vmem:[#allocation5 + $0x50] sm:$0xff]  ;;  %v77_v34 = vadd.f32 %v76_v28, %v75_v23  ;;  %v93_v36 = vsel %vm65_vm3, %v1157_v24, 0.0  ;;  %v94_v37 = vsel %vm65_vm3, %v1159_v25, 0.0 }
  0x2d   :  { %v1173_v33 = vld [vmem:[#allocation5 + $0x58] sm:$0xff]  ;;  %v86_v35 = vadd.f32 %v85_v30, %v84_v29  ;;  %v1179_v38 = vld [vmem:[#allocation5 + $0x60] sm:$0xff]  ;;  %v69_v39 = vrot.slane %v68_v27, 4  ;;  %v95_v40 = vadd.f32 %v94_v37, %v93_v36  ;;  %v102_v41 = vsel %vm65_vm3, %v1161_v26, 0.0  ;;  %v1185_v43 = vld [vmem:[#allocation5 + $0x68] sm:$0xff] }
  0x2e   :  { %v103_v42 = vsel %vm65_vm3, %v1169_v31, 0.0  ;;  %v1187_v44 = vld [vmem:[#allocation5 + $0x70] sm:$0xff]  ;;  %v78_v45 = vrot.slane %v77_v34, 4  ;;  %v111_v48 = vsel %vm65_vm3, %v1171_v32, 0.0  ;;  %v112_v51 = vsel %vm65_vm3, %v1173_v33, 0.0  ;;  %v1195_v53 = vld [vmem:[#allocation5 + $0x78] sm:$0xff] }
  0x2f   :  { %v87_v46 = vrot.slane %v86_v35, 4  ;;  %v104_v47 = vadd.f32 %v103_v42, %v102_v41  ;;  %v70_v49 = vadd.f32 %v69_v39, %v68_v27  ;;  %v96_v50 = vrot.slane %v95_v40, 4 }
  0x30   :  { %v120_v52 = vsel %vm65_vm3, %v1179_v38, 0.0  ;;  %v79_v54 = vadd.f32 %v78_v45, %v77_v34  ;;  %v113_v57 = vadd.f32 %v112_v51, %v111_v48  ;;  %v121_v60 = vsel %vm65_vm3, %v1185_v43, 0.0 }
  0x31   :  { %v88_v55 = vadd.f32 %v87_v46, %v86_v35  ;;  %v105_v56 = vrot.slane %v104_v47, 4  ;;  %v71_v58 = vrot.slane %v70_v49, 2  ;;  %v97_v59 = vadd.f32 %v96_v50, %v95_v40 }
  0x32   :  { %v129_v61 = vsel %vm65_vm3, %v1187_v44, 0.0  ;;  %v80_v62 = vrot.slane %v79_v54, 2  ;;  %v114_v1 = vrot.slane %v113_v57, 4  ;;  %v122_v4 = vadd.f32 %v121_v60, %v120_v52 }
  0x33   :  { %861 = vmatmul.mubr.msk.bf16.gmra.mrb[4].mxu0 %vm179_vm1, %v177_v13  ;;  %v89_v63 = vrot.slane %v88_v55, 2  ;;  %v106_v0 = vadd.f32 %v105_v56, %v104_v47  ;;  %v72_v2 = vadd.f32 %v71_v58, %v70_v49  ;;  %v98_v3 = vrot.slane %v97_v59, 2 }
  0x34   :  { %878 = vmatprep.mubr.msk.bf16.mxu0 %vm1062_vm2, %v1061_v14  ;;  %v130_v5 = vsel %vm65_vm3, %v1195_v53, 0.0  ;;  %v81_v6 = vadd.f32 %v80_v62, %v79_v54  ;;  %v115_v9 = vadd.f32 %v114_v1, %v113_v57  ;;  %v123_v12 = vrot.slane %v122_v4, 4 }
  0x35   :  { %v90_v7 = vadd.f32 %v89_v63, %v88_v55  ;;  %v107_v8 = vrot.slane %v106_v0, 2  ;;  %v73_v10 = vrot.slane %v72_v2, 1  ;;  %v99_v11 = vadd.f32 %v98_v3, %v97_v59 }
  0x36   :  { %v131_v13 = vadd.f32 %v130_v5, %v129_v61  ;;  %v82_v21 = vrot.slane %v81_v6, 1  ;;  %v116_v27 = vrot.slane %v115_v9, 2  ;;  %v124_v30 = vadd.f32 %v123_v12, %v122_v4 }
  0x37   :  { %v91_v22 = vrot.slane %v90_v7, 1  ;;  %v108_v23 = vadd.f32 %v107_v8, %v106_v0  ;;  %v74_v28 = vadd.f32 %v73_v10, %v72_v2  ;;  %v100_v29 = vrot.slane %v99_v11, 1 }
  0x38   :  { %v132_v34 = vrot.slane %v131_v13, 4  ;;  %v83_v35 = vadd.f32 %v82_v21, %v81_v6  ;;  %v117_v39 = vadd.f32 %v116_v27, %v115_v9  ;;  %v125_v41 = vrot.slane %v124_v30, 2  ;;  %v920_v9 = vld [vmem:[%s1301_s0] sm:$0xff]  }
  0x39   :  { %v92_v36 = vadd.f32 %v91_v22, %v90_v7  ;;  %v109_v37 = vrot.slane %v108_v23, 1  ;;  %v101_v40 = vadd.f32 %v100_v29, %v99_v11  ;;  %vm154_vm8 = vcmask 1045509  }
  0x3a   :  { %v133_v42 = vadd.f32 %v132_v34, %v131_v13  ;;  %v118_v46 = vrot.slane %v117_v39, 1  ;;  %v147_v47 = vsel %vm146_vm4, %v83_v35, %v74_v28  ;;  %v126_v48 = vadd.f32 %v125_v41, %v124_v30 }
  0x3b   :  { %v110_v45 = vadd.f32 %v109_v37, %v108_v23  ;;  %v149_v50 = vsel %vm148_vm5, %v92_v36, %v147_v47  ;;  %vm156_vm9 = vcmask 1046534   ;;  %vm158_vm10 = vcmask 1047559  }
  0x3c   :  { %v134_v49 = vrot.slane %v133_v42, 2  ;;  %v119_v51 = vadd.f32 %v118_v46, %v117_v39  ;;  %v151_v52 = vsel %vm150_vm6, %v101_v40, %v149_v50  ;;  %v127_v54 = vrot.slane %v126_v48, 1 }
  0x3d   :  { %v153_v56 = vsel %vm152_vm7, %v110_v45, %v151_v52  ;;  %vm164_vm11 = vcmask 7168   ;;  %vm455_vm12 = vcmp.gt.f32.partialorder %v1147_v19, 0.0  ;;  %vm328_vm13 = vcmp.gt.f32.partialorder %v1139_v15, 0.0 }
  0x3e   :  { %v135_v55 = vadd.f32 %v134_v49, %v133_v42  ;;  %v155_v57 = vsel %vm154_vm8, %v119_v51, %v153_v56  ;;  %v128_v58 = vadd.f32 %v127_v54, %v126_v48  ;;  %vm456_vm14 = vcmp.gt.f32.partialorder %v1149_v20, 0.0 }
  0x3f   :  { %vm329_vm15 = vcmp.gt.f32.partialorder %v1141_v16, 0.0  ;;  %vm584_vm4 = vcmp.gt.f32.partialorder %v1169_v31, 0.0  ;;  %vm519_vm5 = vcmp.gt.f32.partialorder %v1157_v24, 0.0  ;;  %vm711_vm6 = vcmp.gt.f32.partialorder %v1179_v38, 0.0 }
  0x40   :  { %v136_v59 = vrot.slane %v135_v55, 1  ;;  %v157_v61 = vsel %vm156_vm9, %v128_v58, %v155_v57  ;;  %vm520_vm7 = vcmp.gt.f32.partialorder %v1159_v25, 0.0  ;;  %vm712_vm8 = vcmp.gt.f32.partialorder %v1185_v43, 0.0 }
  0x41   :  { %vm647_vm9 = vcmp.gt.f32.partialorder %v1171_v32, 0.0 }
  0x42   :  { %v137_v60 = vadd.f32 %v136_v59, %v135_v55 }
  0x44   :  { %v159_v62 = vsel %vm158_vm10, %v137_v60, %v157_v61  ;;  %vm648_vm10 = vcmp.gt.f32.partialorder %v1173_v33, 0.0 }
  0x45   :  { %v161_v63 = vsel %vm65_vm3, %v159_v62, 0.0 }
  0x46   :  { %162 = vadd.xlane.f32.xlu0 %v161_v63 }
  0xd3   :  { %v163_v39 = vpop.xlane.xlu0 %162 }
  0xd4   :  { %165 = vst.msk [vmem:[%s1306_s5] sm:$0xff] %vm164_vm11, %v163_v39  ;;  %vm775_vm11 = vcmp.gt.f32.partialorder %v1187_v44, 0.0  ;;  %s1063_s5 = smov [#allocation7]  }
  0xd5   :  { %s787_s21 = sshll.u32 %s1063_s5, 4  ;;  %s788_s21 = int_to_ptr.vmem [resolvable:$true] %s787_s21 }
  0xd6   :  { %s1029_s22 = scalar_lea.vmem %s788_s21, 2048  ;;  %p1034_p3 = scmp.lt.s32.totalorder %s788_s21, %s788_s21 }
  0xd7   :  { %p1030_p2 = scmp.ne.s32.totalorder %s788_s21, %s1029_s22  ;;  %p1035_p4 = scmp.lt.s32.totalorder %s1029_s22, %s1029_s22 }
  0xd9   :  { %p1036_p5 = por %p1035_p4, %p1034_p3 }
  0xdb   :  { %p1037_p6 = pnand %p1036_p5, %p1030_p2 }
  0xfe   :  { %v858_v0 = vpop.f32.mrb[0].mxu0 }
  0xff   :  { %v398_v1 = vpack.c.bf16 %v858_v0, %v858_v0  ;;  %v230_v2 = vpop.f32.mrb[1].mxu0 }
 0x100   :  { %v263_v3 = vpack.c.bf16 %v230_v2, %v230_v2  ;;  %v859_v4 = vpop.f32.mrb[2].mxu0 }
 0x101   :  { %v400_v5 = vsel %vm192_vm0, %v398_v1, 0  ;;  %v233_v6 = vpop.f32.mrb[3].mxu0  ;;  %v462_v27 = vpack.c.bf16 %v859_v4, %v859_v4 }
 0x102   :  { %v334_v7 = vpack.c.bf16 %v233_v6, %v233_v6  ;;  %877 = vmatpush3.bf16.msra.mxu0 %v400_v5  ;;  %v273_v8 = vsel %vm192_vm0, %v263_v3, 0 }
 0x103   :  { %865 = vmatpush3.bf16.msra.mxu1 %v273_v8  ;;  %888 = vmatprep.subr.bf16.mxu0 %v1061_v14  ;;  %v464_v30 = vsel %vm192_vm0, %v462_v27, 0 }
 0x104   :  { %870 = vmatprep.subr.bf16.mxu1 %v1061_v14  ;;  %v336_v10 = vsel %vm192_vm0, %v334_v7, 0 }
 0x105   :  { %879 = vmatmul.mubr.msk.bf16.vlgmr.msra.gmra.mrb[8].mxu0 %vm179_vm1, %v920_v9 }
 0x106   :  { %867 = vmatmul.mubr.msk.bf16.vlgmr.msra.gmra.mrb[0].mxu1 %vm179_vm1, %v920_v9  ;;  %v862_v11 = vpop.f32.mrb[4].mxu0  ;;  %890 = vmatprep.mubr.msk.bf16.mxu0 %vm1062_vm2, %v1061_v14 }
 0x107   :  { %871 = vmatpush3.bf16.msra.mxu1 %v336_v10  ;;  %v246_v12 = vpop.f32.mrb[5].mxu0  ;;  %872 = vmatprep.mubr.msk.bf16.mxu1 %vm1062_vm2, %v1061_v14  ;;  %v654_v13 = vpack.c.bf16 %v862_v11, %v862_v11 }
 0x108   :  { %v526_v21 = vpack.c.bf16 %v246_v12, %v246_v12  ;;  %882 = vmatprep.subr.bf16.mxu1 %v1061_v14  ;;  %v863_v22 = vpop.f32.mrb[6].mxu0 }
 0x109   :  { %v249_v23 = vpop.f32.mrb[7].mxu0  ;;  %v656_v29 = vsel %vm192_vm0, %v654_v13, 0  ;;  %v718_v36 = vpack.c.bf16 %v863_v22, %v863_v22 }
 0x10a   :  { %v528_v28 = vsel %vm192_vm0, %v526_v21, 0  ;;  %v590_v34 = vpack.c.bf16 %v249_v23, %v249_v23 }
 0x10b   :  { %889 = vmatpush3.bf16.msra.mxu0 %v528_v28  ;;  %v720_v37 = vsel %vm192_vm0, %v718_v36, 0 }
 0x10c   :  { %900 = vmatprep.subr.bf16.mxu0 %v1061_v14  ;;  %v592_v35 = vsel %vm192_vm0, %v590_v34, 0  ;;  %vm391_vm0 = vcmp.gt.f32.partialorder %v1143_v17, 0.0 }
 0x10e   :  { %873 = vmatmul.mubr.msk.bf16.vlgmr.msra.gmra.mrb[4].mxu1 %vm179_vm1, %v920_v9  ;;  %891 = vmatmul.mubr.msk.bf16.vlgmr.msra.gmra.mrb[12].mxu0 %vm179_vm1, %v920_v9 }
 0x10f   :  { %883 = vmatpush3.bf16.msra.mxu1 %v464_v30  ;;  %901 = vmatpush3.bf16.msra.mxu0 %v656_v29 }
 0x110   :  { %884 = vmatprep.mubr.msk.bf16.mxu1 %vm1062_vm2, %v1061_v14  ;;  %894 = vmatprep.subr.bf16.mxu1 %v1061_v14 }
 0x111   :  { %902 = vmatprep.mubr.msk.bf16.mxu0 %vm1062_vm2, %v1061_v14 }
 0x116   :  { %885 = vmatmul.mubr.msk.bf16.vlgmr.msra.gmra.mrb[8].mxu1 %vm179_vm1, %v920_v9  ;;  %903 = vmatmul.mubr.msk.bf16.vlgmr.msra.gmra.mrb[16].mxu0 %vm179_vm1, %v920_v9 }
 0x117   :  { %895 = vmatpush3.bf16.msra.mxu1 %v592_v35  ;;  %896 = vmatprep.mubr.msk.bf16.mxu1 %vm1062_vm2, %v1061_v14 }
 0x118   :  { %906 = vmatprep.subr.bf16.mxu1 %v1061_v14 }
 0x11e   :  { %897 = vmatmul.mubr.msk.bf16.vlgmr.msra.gmra.mrb[12].mxu1 %vm179_vm1, %v920_v9 }
 0x11f   :  { %907 = vmatpush3.bf16.msra.mxu1 %v720_v37  ;;  %908 = vmatprep.mubr.msk.bf16.mxu1 %vm1062_vm2, %v1061_v14  ;;  %vm392_vm2 = vcmp.gt.f32.partialorder %v1145_v18, 0.0 }
 0x126   :  { %909 = vmatmul.mubr.msk.bf16.vlgmr.msra.gmra.mrb[16].mxu1 %vm179_vm1, %v920_v9  ;;  %vm583_vm1 = vcmp.gt.f32.partialorder %v1161_v26, 0.0 }
 0x1d8   :  { %v436_v40 = vpop.f32.mrb[8].mxu0 }
 0x1d9   :  { %v309_v41 = vpop.f32.mrb[0].mxu1  ;;  %v816_v42 = vmul.f32 -1.442695, %v436_v40  ;;  %v880_v45 = vpop.f32.mrb[9].mxu0 }
 0x1da   :  { %v810_v46 = vmul.f32 -1.442695, %v309_v41  ;;  %v868_v47 = vpop.f32.mrb[1].mxu1  ;;  %v439_v48 = vpop.f32.mrb[10].mxu0 }
 0x1db   :  { %v312_v49 = vpop.f32.mrb[2].mxu1  ;;  %921 = vpow2.f32 %v816_v42  ;;  %v817_v50 = vmul.f32 -1.442695, %v439_v48  ;;  %v881_v51 = vpop.f32.mrb[11].mxu0 }
 0x1dc   :  { %923 = vpow2.f32 %v810_v46  ;;  %v811_v14 = vmul.f32 -1.442695, %v312_v49  ;;  %v869_v52 = vpop.f32.mrb[3].mxu1 }
 0x1dd   :  { %925 = vpow2.f32 %v817_v50 }
 0x1de   :  { %927 = vpow2.f32 %v811_v14 }
 0x1e1   :  { %v372_v54 = vpop.f32.mrb[4].mxu1  ;;  %v564_v55 = vpop.f32.mrb[12].mxu0 }
 0x1e2   :  { %v813_v56 = vmul.f32 -1.442695, %v372_v54  ;;  %v874_v57 = vpop.f32.mrb[5].mxu1  ;;  %v822_v58 = vmul.f32 -1.442695, %v564_v55  ;;  %v892_v59 = vpop.f32.mrb[13].mxu0 }
 0x1e3   :  { %v375_v60 = vpop.f32.mrb[6].mxu1  ;;  %v567_v61 = vpop.f32.mrb[14].mxu0 }
 0x1e4   :  { %929 = vpow2.f32 %v813_v56  ;;  %v814_v62 = vmul.f32 -1.442695, %v375_v60  ;;  %v875_v63 = vpop.f32.mrb[7].mxu1  ;;  %v823_v0 = vmul.f32 -1.442695, %v567_v61  ;;  %v893_v1 = vpop.f32.mrb[15].mxu0 }
 0x1e5   :  { %v922_v2 = vpop.eup %921  ;;  %931 = vpow2.f32 %v822_v58 }
 0x1e6   :  { %v924_v3 = vpop.eup %923  ;;  %933 = vpow2.f32 %v814_v62  ;;  %v449_v4 = vadd.f32 1.0, %v922_v2 }
 0x1e7   :  { %v926_v5 = vpop.eup %925  ;;  %v322_v6 = vadd.f32 1.0, %v924_v3  ;;  %935 = vpow2.f32 %v823_v0 }
 0x1e8   :  { %v928_v7 = vpop.eup %927  ;;  %937 = vrcp.f32 %v449_v4  ;;  %v450_v8 = vadd.f32 1.0, %v926_v5 }
 0x1e9   :  { %939 = vrcp.f32 %v322_v6  ;;  %v323_v9 = vadd.f32 1.0, %v928_v7  ;;  %v500_v10 = vpop.f32.mrb[8].mxu1  ;;  %v692_v11 = vpop.f32.mrb[16].mxu0 }
 0x1ea   :  { %941 = vrcp.f32 %v450_v8  ;;  %v819_v12 = vmul.f32 -1.442695, %v500_v10  ;;  %v886_v13 = vpop.f32.mrb[9].mxu1  ;;  %v828_v21 = vmul.f32 -1.442695, %v692_v11  ;;  %v904_v22 = vpop.f32.mrb[17].mxu0 }
 0x1eb   :  { %943 = vrcp.f32 %v323_v9  ;;  %v503_v23 = vpop.f32.mrb[10].mxu1  ;;  %v695_v27 = vpop.f32.mrb[18].mxu0 }
 0x1ec   :  { %945 = vpow2.f32 %v819_v12  ;;  %v820_v28 = vmul.f32 -1.442695, %v503_v23  ;;  %v887_v29 = vpop.f32.mrb[11].mxu1  ;;  %v829_v30 = vmul.f32 -1.442695, %v695_v27  ;;  %v905_v34 = vpop.f32.mrb[19].mxu0 }
 0x1ed   :  { %947 = vpow2.f32 %v828_v21 }
 0x1ee   :  { %v930_v35 = vpop.eup %929  ;;  %949 = vpow2.f32 %v820_v28 }
 0x1ef   :  { %v932_v36 = vpop.eup %931  ;;  %v385_v37 = vadd.f32 1.0, %v930_v35  ;;  %951 = vpow2.f32 %v829_v30 }
 0x1f0   :  { %v934_v39 = vpop.eup %933  ;;  %v577_v40 = vadd.f32 1.0, %v932_v36 }
 0x1f1   :  { %v936_v41 = vpop.eup %935  ;;  %953 = vrcp.f32 %v385_v37  ;;  %v386_v42 = vadd.f32 1.0, %v934_v39  ;;  %v628_v45 = vpop.f32.mrb[12].mxu1 }
 0x1f2   :  { %v938_v46 = vpop.eup %937  ;;  %955 = vrcp.f32 %v577_v40  ;;  %v578_v47 = vadd.f32 1.0, %v936_v41  ;;  %v825_v48 = vmul.f32 -1.442695, %v628_v45  ;;  %v898_v49 = vpop.f32.mrb[13].mxu1 }
 0x1f3   :  { %v940_v50 = vpop.eup %939  ;;  %957 = vrcp.f32 %v386_v42  ;;  %v457_v51 = vsel %vm455_vm12, %v938_v46, -1.0  ;;  %v631_v14 = vpop.f32.mrb[14].mxu1  ;;  %vm776_vm12 = vcmp.gt.f32.partialorder %v1195_v53, 0.0 }
 0x1f4   :  { %v942_v52 = vpop.eup %941  ;;  %v330_v54 = vsel %vm328_vm13, %v940_v50, -1.0  ;;  %460 = vst.msk [vmem:[#allocation7 + $0x20] sm:$0xff] %vm65_vm3, %v457_v51  ;;  %959 = vrcp.f32 %v578_v47  ;;  %v826_v55 = vmul.f32 -1.442695, %v631_v14  ;;  %v899_v56 = vpop.f32.mrb[15].mxu1 }
 0x1f5   :  { %v944_v57 = vpop.eup %943  ;;  %332 = vst.msk [vmem:[#allocation7] sm:$0xff] %vm65_vm3, %v330_v54  ;;  %v458_v16 = vsel %vm456_vm14, %v942_v52, -1.0  ;;  %961 = vpow2.f32 %v825_v48 }
 0x1f6   :  { %v946_v58 = vpop.eup %945  ;;  %v331_v19 = vsel %vm329_vm15, %v944_v57, -1.0  ;;  %461 = vst.msk [vmem:[#allocation7 + $0x28] sm:$0xff] %vm65_vm3, %v458_v16  ;;  %963 = vpow2.f32 %v826_v55 }
 0x1f7   :  { %v948_v59 = vpop.eup %947  ;;  %333 = vst.msk [vmem:[#allocation7 + $0x8] sm:$0xff] %vm65_vm3, %v331_v19  ;;  %v513_v15 = vadd.f32 1.0, %v946_v58 }
 0x1f8   :  { %v950_v60 = vpop.eup %949  ;;  %v705_v61 = vadd.f32 1.0, %v948_v59 }
 0x1f9   :  { %v952_v62 = vpop.eup %951  ;;  %965 = vrcp.f32 %v513_v15  ;;  %v514_v63 = vadd.f32 1.0, %v950_v60  ;;  %v756_v0 = vpop.f32.mrb[16].mxu1 }
 0x1fa   :  { %967 = vrcp.f32 %v705_v61  ;;  %v706_v20 = vadd.f32 1.0, %v952_v62  ;;  %v831_v1 = vmul.f32 -1.442695, %v756_v0  ;;  %v910_v2 = vpop.f32.mrb[17].mxu1 }
 0x1fb   :  { %v954_v3 = vpop.eup %953  ;;  %969 = vrcp.f32 %v514_v63  ;;  %v759_v4 = vpop.f32.mrb[18].mxu1 }
 0x1fc   :  { %v956_v5 = vpop.eup %955  ;;  %v393_v6 = vsel %vm391_vm0, %v954_v3, -1.0  ;;  %971 = vrcp.f32 %v706_v20  ;;  %v832_v17 = vmul.f32 -1.442695, %v759_v4  ;;  %v911_v7 = vpop.f32.mrb[19].mxu1 }
 0x1fd   :  { %v958_v8 = vpop.eup %957  ;;  %396 = vst.msk [vmem:[#allocation7 + $0x10] sm:$0xff] %vm65_vm3, %v393_v6  ;;  %v585_v9 = vsel %vm583_vm1, %v956_v5, -1.0  ;;  %973 = vpow2.f32 %v831_v1 }
 0x1fe   :  { %v960_v10 = vpop.eup %959  ;;  %v394_v11 = vsel %vm392_vm2, %v958_v8, -1.0  ;;  %588 = vst.msk [vmem:[#allocation7 + $0x40] sm:$0xff] %vm65_vm3, %v585_v9  ;;  %975 = vpow2.f32 %v832_v17 }
 0x1ff   :  { %v962_v18 = vpop.eup %961  ;;  %397 = vst.msk [vmem:[#allocation7 + $0x18] sm:$0xff] %vm65_vm3, %v394_v11  ;;  %v586_v12 = vsel %vm584_vm4, %v960_v10, -1.0 }
 0x200   :  { %v964_v31 = vpop.eup %963  ;;  %589 = vst.msk [vmem:[#allocation7 + $0x48] sm:$0xff] %vm65_vm3, %v586_v12  ;;  %v641_v13 = vadd.f32 1.0, %v962_v18 }
 0x201   :  { %v642_v21 = vadd.f32 1.0, %v964_v31 }
 0x202   :  { %977 = vrcp.f32 %v641_v13 }
 0x203   :  { %v966_v26 = vpop.eup %965  ;;  %979 = vrcp.f32 %v642_v21 }
 0x204   :  { %v968_v22 = vpop.eup %967  ;;  %v521_v23 = vsel %vm519_vm5, %v966_v26, -1.0 }
 0x205   :  { %v970_v27 = vpop.eup %969  ;;  %524 = vst.msk [vmem:[#allocation7 + $0x30] sm:$0xff] %vm65_vm3, %v521_v23  ;;  %v713_v28 = vsel %vm711_vm6, %v968_v22, -1.0 }
 0x206   :  { %v972_v29 = vpop.eup %971  ;;  %v522_v30 = vsel %vm520_vm7, %v970_v27, -1.0  ;;  %716 = vst.msk [vmem:[#allocation7 + $0x60] sm:$0xff] %vm65_vm3, %v713_v28 }
 0x207   :  { %v974_v24 = vpop.eup %973  ;;  %525 = vst.msk [vmem:[#allocation7 + $0x38] sm:$0xff] %vm65_vm3, %v522_v30  ;;  %v714_v38 = vsel %vm712_vm8, %v972_v29, -1.0 }
 0x208   :  { %v976_v34 = vpop.eup %975  ;;  %717 = vst.msk [vmem:[#allocation7 + $0x68] sm:$0xff] %vm65_vm3, %v714_v38  ;;  %v769_v25 = vadd.f32 1.0, %v974_v24 }
 0x209   :  { %v770_v35 = vadd.f32 1.0, %v976_v34 }
 0x20a   :  { %981 = vrcp.f32 %v769_v25 }
 0x20b   :  { %983 = vrcp.f32 %v770_v35 }
 0x20c   :  { %v978_v43 = vpop.eup %977 }
 0x20d   :  { %v980_v36 = vpop.eup %979  ;;  %v649_v37 = vsel %vm647_vm9, %v978_v43, -1.0 }
 0x20e   :  { %652 = vst.msk [vmem:[#allocation7 + $0x50] sm:$0xff] %vm65_vm3, %v649_v37  ;;  %v650_v39 = vsel %vm648_vm10, %v980_v36, -1.0 }
 0x20f   :  { %653 = vst.msk [vmem:[#allocation7 + $0x58] sm:$0xff] %vm65_vm3, %v650_v39 }
 0x214   :  { %v982_v40 = vpop.eup %981 }
 0x215   :  { %v984_v32 = vpop.eup %983  ;;  %v777_v41 = vsel %vm775_vm11, %v982_v40, -1.0 }
 0x216   :  { %780 = vst.msk [vmem:[#allocation7 + $0x70] sm:$0xff] %vm65_vm3, %v777_v41  ;;  %v778_v33 = vsel %vm776_vm12, %v984_v32, -1.0 }
 0x217   :  { %781 = vst.msk [vmem:[#allocation7 + $0x78] sm:$0xff] %vm65_vm3, %v778_v33 }
 0x218   :  { %1040 = shalt.err (!%p1037_p6)
}
 0x219   :  { %s1041_s25 = scalar_lea.hbm %s1305_s4, 2048 }
 0x21a   :  { %p1042_p7 = scmp.ne.s32.totalorder %s1305_s4, %s1041_s25  ;;  %p1045_p8 = scmp.lt.u32.totalorder %s1041_s25, %s1305_s4 }
 0x21c   :  { %p1047_p9 = pnand %p1045_p8, %p1042_p7 }
 0x21e   :  { %1050 = shalt.err (!%p1047_p9)
}
 0x21f   :  { %793 = dma.vmem_to_hbm [thread:$0]  %s788_s21, 2048, %s1305_s4, [#allocation4], %s1058_s28, %s1058_s28, %s1059_s29  }
 0x220   :  { %1055 = dma.done.wait [#allocation4], 2048  }
 0x221   :  { %1056 = vsyncadd [#allocation4], 4294965248 }
 0x222   :  { %801 = vsyncpa [#allocation3], 1 }
 0x223   :  { %802 = vsyncpa [#allocation6], 1 }
 0x224   :  { %803 = vsyncpa [#allocation4], 1 }

</bundles_post_ra>
